<compile_context>
chip_gen: v7x
topology: tpu7x:2x2x1
jax: 0.10.0
libtpu: 0.0.40
codegen_flags: <defaults>
</compile_context>

<pallas_src>
import functools

import jax
import jax.numpy as jnp
from jax import lax
from jax.experimental import pallas as pl
from jax.experimental.pallas import tpu as pltpu

KERNEL_SIZE = 3
PAD = 1  # padding = 1 for kernel_size = 3 (per the module assert)


def _spatial_attention_kernel(w_ref, x_ref, o_ref, sum_ref, max_ref, *, H, W):
    # w_ref   : SMEM (18,) f32 conv weights, flattened [cin, ky, kx]; the 9
    #           avg-channel weights already carry the 1/C factor of the mean.
    # x_ref   : VMEM (1, c_tile, H, W) current (batch, channel-tile) block.
    # o_ref   : VMEM (1, 1, H, W) output block (resident across the C axis).
    # sum_ref : VMEM (H, W) f32 running channel sum.
    # max_ref : VMEM (H, W) f32 running channel max.
    c = pl.program_id(1)
    nc = pl.num_programs(1)

    @pl.when(c == 0)
    def _init():
        sum_ref[...] = jnp.zeros_like(sum_ref)
        max_ref[...] = jnp.full_like(max_ref, -jnp.inf)

    # DMA runs in the input's native dtype; cast per-tile in VMEM (VPU work,
    # hidden under the memory-bound DMA).
    x = x_ref[0].astype(jnp.float32)                     # (c_tile, H, W)
    sum_ref[...] += jnp.sum(x, axis=0)
    max_ref[...] = jnp.maximum(max_ref[...], jnp.max(x, axis=0))

    @pl.when(c == nc - 1)
    def _finalize():
        # Read all 18 weight scalars up front (cheap SMEM scalar loads), not
        # interleaved with the vector accumulate chain.
        w = [w_ref[i] for i in range(2 * KERNEL_SIZE * KERNEL_SIZE)]

        row = lax.broadcasted_iota(jnp.int32, (H, W), 0)
        col = lax.broadcasted_iota(jnp.int32, (H, W), 1)
        # Border-validity masks for each shift, computed once and reused for
        # both the avg and max maps.
        row_ok = {-1: row >= 1, 0: None, 1: row <= H - 2}
        col_ok = {-1: col >= 1, 0: None, 1: col <= W - 2}

        # 1/C is already folded into the avg-channel weights, so the "avg" map
        # is just the running sum.
        maps = (sum_ref[...], max_ref[...])
        acc = jnp.zeros((H, W), jnp.float32)
        for ci in range(2):
            m = maps[ci]
            for ky in range(KERNEL_SIZE):
                dy = ky - PAD
                if dy == 0:
                    mr = m
                else:
                    # shifted[y, x] = m[y + dy, x]; zero the wrapped border row.
                    mr = pltpu.roll(m, (-dy) % H, 0)
                    mr = jnp.where(row_ok[dy], mr, 0.0)
                for kx in range(KERNEL_SIZE):
                    dx = kx - PAD
                    if dx == 0:
                        mc = mr
                    else:
                        # shifted[y, x] = mr[y, x + dx]; zero the wrapped border col.
                        mc = pltpu.roll(mr, (-dx) % W, 1)
                        mc = jnp.where(col_ok[dx], mc, 0.0)
                    acc = acc + w[ci * 9 + ky * 3 + kx] * mc

        o_ref[0, 0] = jax.nn.sigmoid(acc).astype(o_ref.dtype)


def _pick_channel_tile(C, H, W, itemsize, budget_bytes=4 * 1024 * 1024):
    """Largest divisor of C whose (c_tile, H, W) block stays under ~4 MiB.

    Double-buffered that is <= 8 MiB, comfortably inside the default scoped
    VMEM on v5e (16 MiB) and v6e/v7x (32 MiB), and far under v7x's 64 MiB
    physical VMEM.
    """
    per_ch = max(1, H * W * itemsize)
    cap = max(1, budget_bytes // per_ch)
    tc = 1
    for d in range(1, C + 1):
        if C % d == 0 and d <= cap:
            tc = d
    return tc


def spatial_attention(x, weight, *, c_tile=None):
    """x: (N, C, H, W), weight: (1, 2, 3, 3) -> (N, 1, H, W) = sigmoid(conv(cat(mean, max)))."""
    N, C, H, W = x.shape
    assert weight.shape == (1, 2, KERNEL_SIZE, KERNEL_SIZE)
    if c_tile is None:
        c_tile = _pick_channel_tile(C, H, W, jnp.dtype(x.dtype).itemsize)
    assert C % c_tile == 0, "channel tile must divide C"

    # Fold the 1/C of the channel mean into the 9 avg-channel conv weights so
    # the kernel only accumulates a channel SUM.
    w_flat = weight.reshape(-1).astype(jnp.float32)           # (18,)
    scale = jnp.concatenate([jnp.full((9,), 1.0 / C, jnp.float32),
                             jnp.ones((9,), jnp.float32)])
    w_flat = w_flat * scale

    kernel = functools.partial(_spatial_attention_kernel, H=H, W=W)

    return pl.pallas_call(
        kernel,
        out_shape=jax.ShapeDtypeStruct((N, 1, H, W), x.dtype),
        grid_spec=pltpu.PrefetchScalarGridSpec(
            num_scalar_prefetch=0,
            grid=(N, C // c_tile),
            in_specs=[
                pl.BlockSpec(memory_space=pltpu.MemorySpace.SMEM),           # weights
                pl.BlockSpec((1, c_tile, H, W), lambda n, c: (n, c, 0, 0)),  # x tile
            ],
            out_specs=pl.BlockSpec((1, 1, H, W), lambda n, c: (n, 0, 0, 0)),
            scratch_shapes=[
                pltpu.VMEM((H, W), jnp.float32),   # running channel sum
                pltpu.VMEM((H, W), jnp.float32),   # running channel max
            ],
        ),
        compiler_params=pltpu.CompilerParams(
            dimension_semantics=("parallel", "arbitrary")),
    )(w_flat, x)


def _reference(x, weight):
    """Pure-JAX reference matching the PyTorch SpatialAttention module."""
    avg_out = jnp.mean(x, axis=1, keepdims=True)
    max_out = jnp.max(x, axis=1, keepdims=True)
    cat = jnp.concatenate([avg_out, max_out], axis=1)        # (N,2,H,W)
    y = lax.conv_general_dilated(
        cat, weight, window_strides=(1, 1), padding=((PAD, PAD), (PAD, PAD)),
        dimension_numbers=("NCHW", "OIHW", "NCHW"))
    return jax.nn.sigmoid(y)


if __name__ == "__main__":
    key = jax.random.PRNGKey(0)
    kx, kw = jax.random.split(key)

    # Small but lane-dense shapes: W is a multiple of 128 so output stores are
    # full (unmasked) vector stores.
    N, C, H, W = 2, 8, 16, 128
    x = jax.random.normal(kx, (N, C, H, W), dtype=jnp.float32)
    # Deterministic conv weight, shape (out=1, in=2, 3, 3), no bias (bias=False).
    weight = 0.1 * jax.random.normal(kw, (1, 2, KERNEL_SIZE, KERNEL_SIZE),
                                     dtype=jnp.float32)

    ref = _reference(x, weight)

    # 1) Auto channel tile (whole C fits in one block at this toy size).
    out_auto = jax.block_until_ready(spatial_attention(x, weight))
    # 2) Forced channel tiling -> exercises the multi-step running sum/max path
    #    (the pattern that matters for the real 128-channel feature maps in
    #    Spatial_extract).
    out_tiled = jax.block_until_ready(spatial_attention(x, weight, c_tile=2))

    assert out_auto.shape == (N, 1, H, W)
    assert jnp.allclose(out_auto, ref, atol=1e-5, rtol=1e-5), "mismatch (auto tile)"
    assert jnp.allclose(out_tiled, ref, atol=1e-5, rtol=1e-5), "mismatch (c_tile=2)"

    print("KERNEL_OK")
</pallas_src>

<mosaic_0001>
module attributes {stable_mosaic.version = 11 : i64} {
  func.func @_spatial_attention_kernel(%arg0: i32, %arg1: i32, %arg2: memref<18xf32, #tpu.memory_space<smem>>, %arg3: memref<1x8x16x128xf32, #tpu.memory_space<vmem>>, %arg4: memref<1x1x16x128xf32, #tpu.memory_space<vmem>>, %arg5: memref<16x128xf32, #tpu.memory_space<vmem>>, %arg6: memref<16x128xf32, #tpu.memory_space<vmem>>) attributes {dimension_semantics = [#tpu.dimension_semantics<parallel>, #tpu.dimension_semantics<arbitrary>], iteration_bounds = array<i64: 2, 1>, scalar_prefetch = 0 : i64, scratch_operands = 2 : i64, tpu.core_type = #tpu.core_type<tc>, window_params = [{transform_indices = @transform_0, window_bounds = array<i64: 18>}, {transform_indices = @transform_1, window_bounds = array<i64: 1, 8, 16, 128>}, {transform_indices = @transform_2, window_bounds = array<i64: 1, 1, 16, 128>}]} {
    %c0_i32 = arith.constant 0 : i32
    %0 = arith.cmpi eq, %arg1, %c0_i32 : i32
    %1 = arith.extui %0 : i1 to i32
    %c0_i32_0 = arith.constant 0 : i32
    %2 = arith.cmpi ne, %1, %c0_i32_0 : i32
    scf.if %2 {
      %cst_15 = arith.constant 0.000000e+00 : f32
      %16 = vector.broadcast %cst_15 : f32 to vector<16x128xf32>
      %c0_16 = arith.constant 0 : index
      %c0_17 = arith.constant 0 : index
      %17 = vector.load %arg5[%c0_16, %c0_17] : memref<16x128xf32, #tpu.memory_space<vmem>>, vector<16x128xf32>
      tpu.vector_store %arg5[%c0_16, %c0_17], %16 {strides = array<i32>} : memref<16x128xf32, #tpu.memory_space<vmem>>, vector<16x128xf32>,
      %cst_18 = arith.constant 0xFF800000 : f32
      %18 = vector.broadcast %cst_18 : f32 to vector<16x128xf32>
      %c0_19 = arith.constant 0 : index
      %c0_20 = arith.constant 0 : index
      %19 = vector.load %arg6[%c0_19, %c0_20] : memref<16x128xf32, #tpu.memory_space<vmem>>, vector<16x128xf32>
      tpu.vector_store %arg6[%c0_19, %c0_20], %18 {strides = array<i32>} : memref<16x128xf32, #tpu.memory_space<vmem>>, vector<16x128xf32>,
    } else {
    }
    %c0 = arith.constant 0 : index
    %c0_1 = arith.constant 0 : index
    %c0_2 = arith.constant 0 : index
    %c0_3 = arith.constant 0 : index
    %3 = vector.load %arg3[%c0, %c0_1, %c0_2, %c0_3] : memref<1x8x16x128xf32, #tpu.memory_space<vmem>>, vector<1x8x16x128xf32>
    %4 = vector.shape_cast %3 : vector<1x8x16x128xf32> to vector<8x16x128xf32>
    %c0_4 = arith.constant 0 : index
    %c0_5 = arith.constant 0 : index
    %5 = vector.load %arg5[%c0_4, %c0_5] : memref<16x128xf32, #tpu.memory_space<vmem>>, vector<16x128xf32>
    %cst = arith.constant dense<0.000000e+00> : vector<16x128xf32>
    %6 = vector.multi_reduction <add>, %4, %cst [0] : vector<8x16x128xf32> to vector<16x128xf32>
    %7 = arith.addf %5, %6 : vector<16x128xf32>
    %c0_6 = arith.constant 0 : index
    %c0_7 = arith.constant 0 : index
    %8 = vector.load %arg5[%c0_6, %c0_7] : memref<16x128xf32, #tpu.memory_space<vmem>>, vector<16x128xf32>
    tpu.vector_store %arg5[%c0_6, %c0_7], %7 {strides = array<i32>} : memref<16x128xf32, #tpu.memory_space<vmem>>, vector<16x128xf32>,
    %c0_8 = arith.constant 0 : index
    %c0_9 = arith.constant 0 : index
    %9 = vector.load %arg6[%c0_8, %c0_9] : memref<16x128xf32, #tpu.memory_space<vmem>>, vector<16x128xf32>
    %cst_10 = arith.constant dense<0xFF800000> : vector<16x128xf32>
    %10 = vector.multi_reduction <maximumf>, %4, %cst_10 [0] : vector<8x16x128xf32> to vector<16x128xf32>
    %11 = arith.maximumf %9, %10 : vector<16x128xf32>
    %c0_11 = arith.constant 0 : index
    %c0_12 = arith.constant 0 : index
    %12 = vector.load %arg6[%c0_11, %c0_12] : memref<16x128xf32, #tpu.memory_space<vmem>>, vector<16x128xf32>
    tpu.vector_store %arg6[%c0_11, %c0_12], %11 {strides = array<i32>} : memref<16x128xf32, #tpu.memory_space<vmem>>, vector<16x128xf32>,
    %c0_i32_13 = arith.constant 0 : i32
    %13 = arith.cmpi eq, %arg1, %c0_i32_13 : i32
    %14 = arith.extui %13 : i1 to i32
    %c0_i32_14 = arith.constant 0 : i32
    %15 = arith.cmpi ne, %14, %c0_i32_14 : i32
    scf.if %15 {
      %c0_15 = arith.constant 0 : index
      %16 = memref.load %arg2[%c0_15] : memref<18xf32, #tpu.memory_space<smem>>
      %c1 = arith.constant 1 : index
      %17 = memref.load %arg2[%c1] : memref<18xf32, #tpu.memory_space<smem>>
      %c2 = arith.constant 2 : index
      %18 = memref.load %arg2[%c2] : memref<18xf32, #tpu.memory_space<smem>>
      %c3 = arith.constant 3 : index
      %19 = memref.load %arg2[%c3] : memref<18xf32, #tpu.memory_space<smem>>
      %c4 = arith.constant 4 : index
      %20 = memref.load %arg2[%c4] : memref<18xf32, #tpu.memory_space<smem>>
      %c5 = arith.constant 5 : index
      %21 = memref.load %arg2[%c5] : memref<18xf32, #tpu.memory_space<smem>>
      %c6 = arith.constant 6 : index
      %22 = memref.load %arg2[%c6] : memref<18xf32, #tpu.memory_space<smem>>
      %c7 = arith.constant 7 : index
      %23 = memref.load %arg2[%c7] : memref<18xf32, #tpu.memory_space<smem>>
      %c8 = arith.constant 8 : index
      %24 = memref.load %arg2[%c8] : memref<18xf32, #tpu.memory_space<smem>>
      %c9 = arith.constant 9 : index
      %25 = memref.load %arg2[%c9] : memref<18xf32, #tpu.memory_space<smem>>
      %c10 = arith.constant 10 : index
      %26 = memref.load %arg2[%c10] : memref<18xf32, #tpu.memory_space<smem>>
      %c11 = arith.constant 11 : index
      %27 = memref.load %arg2[%c11] : memref<18xf32, #tpu.memory_space<smem>>
      %c12 = arith.constant 12 : index
      %28 = memref.load %arg2[%c12] : memref<18xf32, #tpu.memory_space<smem>>
      %c13 = arith.constant 13 : index
      %29 = memref.load %arg2[%c13] : memref<18xf32, #tpu.memory_space<smem>>
      %c14 = arith.constant 14 : index
      %30 = memref.load %arg2[%c14] : memref<18xf32, #tpu.memory_space<smem>>
      %c15 = arith.constant 15 : index
      %31 = memref.load %arg2[%c15] : memref<18xf32, #tpu.memory_space<smem>>
      %c16 = arith.constant 16 : index
      %32 = memref.load %arg2[%c16] : memref<18xf32, #tpu.memory_space<smem>>
      %c17 = arith.constant 17 : index
      %33 = memref.load %arg2[%c17] : memref<18xf32, #tpu.memory_space<smem>>
      %34 = tpu.iota {dimensions = array<i32: 0>} : vector<16x128xi32>
      %35 = tpu.iota {dimensions = array<i32: 1>} : vector<16x128xi32>
      %c1_i32 = arith.constant 1 : i32
      %36 = vector.broadcast %c1_i32 : i32 to vector<16x128xi32>
      %37 = arith.cmpi sge, %34, %36 : vector<16x128xi32>
      %c14_i32 = arith.constant 14 : i32
      %38 = vector.broadcast %c14_i32 : i32 to vector<16x128xi32>
      %39 = arith.cmpi sle, %34, %38 : vector<16x128xi32>
      %c1_i32_16 = arith.constant 1 : i32
      %40 = vector.broadcast %c1_i32_16 : i32 to vector<16x128xi32>
      %41 = arith.cmpi sge, %35, %40 : vector<16x128xi32>
      %c126_i32 = arith.constant 126 : i32
      %42 = vector.broadcast %c126_i32 : i32 to vector<16x128xi32>
      %43 = arith.cmpi sle, %35, %42 : vector<16x128xi32>
      %c0_17 = arith.constant 0 : index
      %c0_18 = arith.constant 0 : index
      %44 = vector.load %arg5[%c0_17, %c0_18] : memref<16x128xf32, #tpu.memory_space<vmem>>, vector<16x128xf32>
      %c0_19 = arith.constant 0 : index
      %c0_20 = arith.constant 0 : index
      %45 = vector.load %arg6[%c0_19, %c0_20] : memref<16x128xf32, #tpu.memory_space<vmem>>, vector<16x128xf32>
      %cst_21 = arith.constant 0.000000e+00 : f32
      %46 = vector.broadcast %cst_21 : f32 to vector<16x128xf32>
      %c1_i32_22 = arith.constant 1 : i32
      %47 = tpu.dynamic_rotate %44 by %c1_i32_22 dim 0 : vector<16x128xf32>, i32 -> vector<16x128xf32>
      %cst_23 = arith.constant 0.000000e+00 : f32
      %48 = vector.broadcast %cst_23 : f32 to vector<16x128xf32>
      %49 = arith.select %37, %47, %48 : vector<16x128xi1>, vector<16x128xf32>
      %c1_i32_24 = arith.constant 1 : i32
      %50 = tpu.dynamic_rotate %49 by %c1_i32_24 dim 1 : vector<16x128xf32>, i32 -> vector<16x128xf32>
      %cst_25 = arith.constant 0.000000e+00 : f32
      %51 = vector.broadcast %cst_25 : f32 to vector<16x128xf32>
      %52 = arith.select %41, %50, %51 : vector<16x128xi1>, vector<16x128xf32>
      %53 = vector.broadcast %16 : f32 to vector<16x128xf32>
      %54 = arith.mulf %53, %52 : vector<16x128xf32>
      %55 = arith.addf %46, %54 : vector<16x128xf32>
      %56 = vector.broadcast %17 : f32 to vector<16x128xf32>
      %57 = arith.mulf %56, %49 : vector<16x128xf32>
      %58 = arith.addf %55, %57 : vector<16x128xf32>
      %c127_i32 = arith.constant 127 : i32
      %59 = tpu.dynamic_rotate %49 by %c127_i32 dim 1 : vector<16x128xf32>, i32 -> vector<16x128xf32>
      %cst_26 = arith.constant 0.000000e+00 : f32
      %60 = vector.broadcast %cst_26 : f32 to vector<16x128xf32>
      %61 = arith.select %43, %59, %60 : vector<16x128xi1>, vector<16x128xf32>
      %62 = vector.broadcast %18 : f32 to vector<16x128xf32>
      %63 = arith.mulf %62, %61 : vector<16x128xf32>
      %64 = arith.addf %58, %63 : vector<16x128xf32>
      %c1_i32_27 = arith.constant 1 : i32
      %65 = tpu.dynamic_rotate %44 by %c1_i32_27 dim 1 : vector<16x128xf32>, i32 -> vector<16x128xf32>
      %cst_28 = arith.constant 0.000000e+00 : f32
      %66 = vector.broadcast %cst_28 : f32 to vector<16x128xf32>
      %67 = arith.select %41, %65, %66 : vector<16x128xi1>, vector<16x128xf32>
      %68 = vector.broadcast %19 : f32 to vector<16x128xf32>
      %69 = arith.mulf %68, %67 : vector<16x128xf32>
      %70 = arith.addf %64, %69 : vector<16x128xf32>
      %71 = vector.broadcast %20 : f32 to vector<16x128xf32>
      %72 = arith.mulf %71, %44 : vector<16x128xf32>
      %73 = arith.addf %70, %72 : vector<16x128xf32>
      %c127_i32_29 = arith.constant 127 : i32
      %74 = tpu.dynamic_rotate %44 by %c127_i32_29 dim 1 : vector<16x128xf32>, i32 -> vector<16x128xf32>
      %cst_30 = arith.constant 0.000000e+00 : f32
      %75 = vector.broadcast %cst_30 : f32 to vector<16x128xf32>
      %76 = arith.select %43, %74, %75 : vector<16x128xi1>, vector<16x128xf32>
      %77 = vector.broadcast %21 : f32 to vector<16x128xf32>
      %78 = arith.mulf %77, %76 : vector<16x128xf32>
      %79 = arith.addf %73, %78 : vector<16x128xf32>
      %c15_i32 = arith.constant 15 : i32
      %80 = tpu.dynamic_rotate %44 by %c15_i32 dim 0 : vector<16x128xf32>, i32 -> vector<16x128xf32>
      %cst_31 = arith.constant 0.000000e+00 : f32
      %81 = vector.broadcast %cst_31 : f32 to vector<16x128xf32>
      %82 = arith.select %39, %80, %81 : vector<16x128xi1>, vector<16x128xf32>
      %c1_i32_32 = arith.constant 1 : i32
      %83 = tpu.dynamic_rotate %82 by %c1_i32_32 dim 1 : vector<16x128xf32>, i32 -> vector<16x128xf32>
      %cst_33 = arith.constant 0.000000e+00 : f32
      %84 = vector.broadcast %cst_33 : f32 to vector<16x128xf32>
      %85 = arith.select %41, %83, %84 : vector<16x128xi1>, vector<16x128xf32>
      %86 = vector.broadcast %22 : f32 to vector<16x128xf32>
      %87 = arith.mulf %86, %85 : vector<16x128xf32>
      %88 = arith.addf %79, %87 : vector<16x128xf32>
      %89 = vector.broadcast %23 : f32 to vector<16x128xf32>
      %90 = arith.mulf %89, %82 : vector<16x128xf32>
      %91 = arith.addf %88, %90 : vector<16x128xf32>
      %c127_i32_34 = arith.constant 127 : i32
      %92 = tpu.dynamic_rotate %82 by %c127_i32_34 dim 1 : vector<16x128xf32>, i32 -> vector<16x128xf32>
      %cst_35 = arith.constant 0.000000e+00 : f32
      %93 = vector.broadcast %cst_35 : f32 to vector<16x128xf32>
      %94 = arith.select %43, %92, %93 : vector<16x128xi1>, vector<16x128xf32>
      %95 = vector.broadcast %24 : f32 to vector<16x128xf32>
      %96 = arith.mulf %95, %94 : vector<16x128xf32>
      %97 = arith.addf %91, %96 : vector<16x128xf32>
      %c1_i32_36 = arith.constant 1 : i32
      %98 = tpu.dynamic_rotate %45 by %c1_i32_36 dim 0 : vector<16x128xf32>, i32 -> vector<16x128xf32>
      %cst_37 = arith.constant 0.000000e+00 : f32
      %99 = vector.broadcast %cst_37 : f32 to vector<16x128xf32>
      %100 = arith.select %37, %98, %99 : vector<16x128xi1>, vector<16x128xf32>
      %c1_i32_38 = arith.constant 1 : i32
      %101 = tpu.dynamic_rotate %100 by %c1_i32_38 dim 1 : vector<16x128xf32>, i32 -> vector<16x128xf32>
      %cst_39 = arith.constant 0.000000e+00 : f32
      %102 = vector.broadcast %cst_39 : f32 to vector<16x128xf32>
      %103 = arith.select %41, %101, %102 : vector<16x128xi1>, vector<16x128xf32>
      %104 = vector.broadcast %25 : f32 to vector<16x128xf32>
      %105 = arith.mulf %104, %103 : vector<16x128xf32>
      %106 = arith.addf %97, %105 : vector<16x128xf32>
      %107 = vector.broadcast %26 : f32 to vector<16x128xf32>
      %108 = arith.mulf %107, %100 : vector<16x128xf32>
      %109 = arith.addf %106, %108 : vector<16x128xf32>
      %c127_i32_40 = arith.constant 127 : i32
      %110 = tpu.dynamic_rotate %100 by %c127_i32_40 dim 1 : vector<16x128xf32>, i32 -> vector<16x128xf32>
      %cst_41 = arith.constant 0.000000e+00 : f32
      %111 = vector.broadcast %cst_41 : f32 to vector<16x128xf32>
      %112 = arith.select %43, %110, %111 : vector<16x128xi1>, vector<16x128xf32>
      %113 = vector.broadcast %27 : f32 to vector<16x128xf32>
      %114 = arith.mulf %113, %112 : vector<16x128xf32>
      %115 = arith.addf %109, %114 : vector<16x128xf32>
      %c1_i32_42 = arith.constant 1 : i32
      %116 = tpu.dynamic_rotate %45 by %c1_i32_42 dim 1 : vector<16x128xf32>, i32 -> vector<16x128xf32>
      %cst_43 = arith.constant 0.000000e+00 : f32
      %117 = vector.broadcast %cst_43 : f32 to vector<16x128xf32>
      %118 = arith.select %41, %116, %117 : vector<16x128xi1>, vector<16x128xf32>
      %119 = vector.broadcast %28 : f32 to vector<16x128xf32>
      %120 = arith.mulf %119, %118 : vector<16x128xf32>
      %121 = arith.addf %115, %120 : vector<16x128xf32>
      %122 = vector.broadcast %29 : f32 to vector<16x128xf32>
      %123 = arith.mulf %122, %45 : vector<16x128xf32>
      %124 = arith.addf %121, %123 : vector<16x128xf32>
      %c127_i32_44 = arith.constant 127 : i32
      %125 = tpu.dynamic_rotate %45 by %c127_i32_44 dim 1 : vector<16x128xf32>, i32 -> vector<16x128xf32>
      %cst_45 = arith.constant 0.000000e+00 : f32
      %126 = vector.broadcast %cst_45 : f32 to vector<16x128xf32>
      %127 = arith.select %43, %125, %126 : vector<16x128xi1>, vector<16x128xf32>
      %128 = vector.broadcast %30 : f32 to vector<16x128xf32>
      %129 = arith.mulf %128, %127 : vector<16x128xf32>
      %130 = arith.addf %124, %129 : vector<16x128xf32>
      %c15_i32_46 = arith.constant 15 : i32
      %131 = tpu.dynamic_rotate %45 by %c15_i32_46 dim 0 : vector<16x128xf32>, i32 -> vector<16x128xf32>
      %cst_47 = arith.constant 0.000000e+00 : f32
      %132 = vector.broadcast %cst_47 : f32 to vector<16x128xf32>
      %133 = arith.select %39, %131, %132 : vector<16x128xi1>, vector<16x128xf32>
      %c1_i32_48 = arith.constant 1 : i32
      %134 = tpu.dynamic_rotate %133 by %c1_i32_48 dim 1 : vector<16x128xf32>, i32 -> vector<16x128xf32>
      %cst_49 = arith.constant 0.000000e+00 : f32
      %135 = vector.broadcast %cst_49 : f32 to vector<16x128xf32>
      %136 = arith.select %41, %134, %135 : vector<16x128xi1>, vector<16x128xf32>
      %137 = vector.broadcast %31 : f32 to vector<16x128xf32>
      %138 = arith.mulf %137, %136 : vector<16x128xf32>
      %139 = arith.addf %130, %138 : vector<16x128xf32>
      %140 = vector.broadcast %32 : f32 to vector<16x128xf32>
      %141 = arith.mulf %140, %133 : vector<16x128xf32>
      %142 = arith.addf %139, %141 : vector<16x128xf32>
      %c127_i32_50 = arith.constant 127 : i32
      %143 = tpu.dynamic_rotate %133 by %c127_i32_50 dim 1 : vector<16x128xf32>, i32 -> vector<16x128xf32>
      %cst_51 = arith.constant 0.000000e+00 : f32
      %144 = vector.broadcast %cst_51 : f32 to vector<16x128xf32>
      %145 = arith.select %43, %143, %144 : vector<16x128xi1>, vector<16x128xf32>
      %146 = vector.broadcast %33 : f32 to vector<16x128xf32>
      %147 = arith.mulf %146, %145 : vector<16x128xf32>
      %148 = arith.addf %142, %147 : vector<16x128xf32>
      %149 = arith.negf %148 : vector<16x128xf32>
      %150 = math.exp %149 : vector<16x128xf32>
      %cst_52 = arith.constant 1.000000e+00 : f32
      %151 = vector.broadcast %cst_52 : f32 to vector<16x128xf32>
      %152 = arith.addf %151, %150 : vector<16x128xf32>
      %153 = arith.divf %151, %152 : vector<16x128xf32>
      %c0_53 = arith.constant 0 : index
      %c0_54 = arith.constant 0 : index
      %c0_55 = arith.constant 0 : index
      %c0_56 = arith.constant 0 : index
      %154 = vector.load %arg4[%c0_53, %c0_54, %c0_55, %c0_56] : memref<1x1x16x128xf32, #tpu.memory_space<vmem>>, vector<1x1x16x128xf32>
      %155 = vector.shape_cast %154 : vector<1x1x16x128xf32> to vector<16x128xf32>
      %156 = vector.shape_cast %153 : vector<16x128xf32> to vector<1x1x16x128xf32>
      tpu.vector_store %arg4[%c0_53, %c0_54, %c0_55, %c0_56], %156 {strides = array<i32>} : memref<1x1x16x128xf32, #tpu.memory_space<vmem>>, vector<1x1x16x128xf32>,
    } else {
    }
    return
  }
  func.func @transform_0(%arg0: i32, %arg1: i32) -> i32 {
    %c0_i32 = arith.constant 0 : i32
    %c0_i32_0 = arith.constant 0 : i32
    return %c0_i32 : i32
  }
  func.func @transform_1(%arg0: i32, %arg1: i32) -> (i32, i32, i32, i32) {
    %c0_i32 = arith.constant 0 : i32
    %c0_i32_0 = arith.constant 0 : i32
    %c0_i32_1 = arith.constant 0 : i32
    return %arg0, %arg1, %c0_i32, %c0_i32_0 : i32, i32, i32, i32
  }
  func.func @transform_2(%arg0: i32, %arg1: i32) -> (i32, i32, i32, i32) {
    %c0_i32 = arith.constant 0 : i32
    %c0_i32_0 = arith.constant 0 : i32
    %c0_i32_1 = arith.constant 0 : i32
    %c0_i32_2 = arith.constant 0 : i32
    return %arg0, %c0_i32, %c0_i32_0, %c0_i32_1 : i32, i32, i32, i32
  }
}

</mosaic_0001>

<bundles_post_ra>
// kernel: tpu_custom_call.1
= control target key start
LH: loop header
LB: loop body
LE: loop exit
PB: predicated region body
PF: predicated region fallthrough
CT: control target
= control target key end

     0   :  { %7 = vsyncpa [#allocation7], 0  ;;  %s1329_s0 = inlined_call_operand.hbm [shape: f32[18], index: 0, kind: input, shape index: {}]   ;;  %s1330_s1 = inlined_call_operand.hbm [shape: f32[2,8,16,128], index: 1, kind: input, shape index: {}]   ;;  %s1331_s2 = inlined_call_operand.hbm [shape: f32[2,1,16,128], index: 2, kind: output, shape index: {}]  }
   0x1   :  { %8 = vsyncpa [#allocation5], 0 }
   0x2   :  { %10 = vsyncpa [#allocation5 + $0x1], 0 }
   0x3   :  { %11 = vsyncpa [#allocation6], 0 }
   0x4   :  { %13 = vsyncpa [#allocation6 + $0x1], 0  ;;  %s884_s9 = smov 0   ;;  %s886_s10 = smov 0  }
   0x5   :  { %s888_s11 = smov 0   ;;  %s890_s12 = smov 0  }
   0x6   :  { %s892_s13 = smov 0   ;;  %s894_s14 = smov 0  }
   0x7 LB: > { %s604_s15 = sadd.s32 4294967295, %s858_s14   ;;  %s605_s16 = sadd.s32 4294967294, %s858_s14   ;;  %s858_s14 = sphi %s894_s14, %s19_s14   ;;  %s854_s13 = sphi %s892_s13, %s1351_s13   ;;  %s850_s12 = sphi %s890_s12, %s1350_s12   ;;  %s846_s11 = sphi %s888_s11, %s1349_s11   ;;  %s842_s10 = sphi %s886_s10, %s1348_s10   ;;  %s838_s9 = sphi %s884_s9, %s1347_s9  }
   0x8   : > { %s61_s17 = sadd.s32 1, %s846_s11  ;;  %p68_p0 = scmp.ne.s32.totalorder %s846_s11, %s842_s10 }
   0x9   : > { %p69_p1 = scmp.eq.s32.totalorder %s858_s14, 0  ;;  %p74_p2 = scmp.ne.s32.totalorder %s842_s10, %s838_s9 }
   0xa   : > { %p922_p3 = scmp.eq.s32.totalorder %s604_s15, 0  ;;  %p98_p4 = scmp.eq.s32.totalorder %s604_s15, 1 }
   0xb   : > { %p70_p5 = por %p69_p1, %p68_p0  ;;  %p104_p6 = scmp.eq.s32.totalorder %s605_s16, 1 }
   0xc   : > { %s1336_s18 = scalar_select %p922_p3, 1, 0 }
   0xd   : > { %p928_p7 = por %p922_p3, %p74_p2  ;;  %p932_p8 = por %p98_p4, %p68_p0 }
   0xe   : > { %p936_p9 = por %p104_p6, %p74_p2  ;;  %p606_p10 = scmp.ge.s32.totalorder %s858_s14, 1 }
   0xf   : > { %s1337_s19 = scalar_select %p928_p7, 1, 0 }
  0x10   : > { %s1338_s20 = scalar_select %p932_p8, 1, 0 }
  0x11   : > { %s1339_s21 = scalar_select %p936_p9, 1, 0 }
  0x12   : > { %p111_p11 = scmp.lt.s32.totalorder %s858_s14, 3  ;;  %p663_p1 = scmp.lt.s32.totalorder %s858_s14, 2 }
  0x13   : > { %s133_s23 = sand.u32 1, %s846_s11   ;;  %s31_s25 = sadd.s32 1, %s854_s13 }
  0x14   : > { %p943_p13 = pnand %p606_p10, %p111_p11  ;;  %p951_p0 = pnand %p663_p1, %p70_p5 }
  0x15   : > { %s609_s26 = sshll.u32 %s133_s23, 7  ;;  %p33_p4 = scmp.ge.s32.totalorder %s31_s25, 2 }
  0x16   : > { %p650_p7 = pneg %p943_p13  ;;  %s729_s29 = scalar_lea.hbm %s1329_s0, 16 }
  0x17   : > { %p730_p6 = scmp.ne.s32.totalorder %s1329_s0, %s729_s29  ;;  %p736_p5 = scmp.lt.u32.totalorder %s729_s29, %s1329_s0 }
  0x18   : > { %p651_p2 = pnand %p650_p7, %p922_p3 }
  0x1a   : > { %p731_p10 = pneg %p651_p2 }
  0x1c   : > { %p732_p11 = pnand %p731_p10, %p730_p6 }
  0x1e   : > { %p733_p12 = pneg %p732_p11 }
  0x20   : > { %p738_p1 = pnand %p736_p5, %p733_p12 }
  0x22   : > { %741 = shalt.err (!%p738_p1)
}
  0x23   : > { %s860_s6 = smov [#allocation4]   ;;  %s1353_s25 = smov (%p33_p4, %s31_s25), 0 }
  0x24   : > { %653 = dma.hbm_to_smem (!%p651_p2), %s1329_s0, 16, %s860_s6, [#allocation7]  }
  0x25   : > { %s640_s15 = sshll.u32 %s854_s13, 11  ;;  %s56_s16 = ssub.s32 %s854_s13, %s1353_s25 }
  0x26   : > { %s978_s29 = scalar_lea.hbm %s1330_s1, %s640_s15  ;;  %p59_p7 = scmp.eq.s32.totalorder %s56_s16, 0 }
  0x27   : > { %s137_s30 = scalar_lea.vmem [#allocation8], %s609_s26  ;;  %s987_s5 = scalar_lea.sflag [#allocation5], %s133_s23 }
  0x28   : > { %s147_s3 = sshll.u32 %s137_s30, 4  ;;  %s742_s6 = scalar_lea.hbm %s978_s29, 2048  ;;  %s980_s3 = int_to_ptr.vmem [resolvable:$true] %s147_s3 }
  0x29   : > { %s985_s4 = scalar_select %p59_p7, %s846_s11, %s61_s17  }
  0x2a   : > { %p743_p12 = scmp.ne.s32.totalorder %s978_s29, %s742_s6  ;;  %p744_p2 = pneg %p951_p0 }
  0x2b   : > { %s747_s26 = scalar_lea.hbm %s1330_s1, 4096  ;;  %p748_p10 = scmp.lt.u32.totalorder %s978_s29, %s1330_s1 }
  0x2c   : > { %p745_p4 = pnand %p744_p2, %p743_p12  ;;  %p749_p11 = scmp.lt.u32.totalorder %s747_s26, %s742_s6 }
  0x2d   : > { %p751_p1 = scmp.lt.u32.totalorder %s742_s6, %s978_s29 }
  0x2e   : > { %p746_p6 = pneg %p745_p4  ;;  %p750_p5 = por %p749_p11, %p748_p10 }
  0x30   : > { %p752_p7 = por %p751_p1, %p750_p5 }
  0x32   : > { %p753_p9 = pnand %p752_p7, %p746_p6 }
  0x34   : > { %756 = shalt.err (!%p753_p9)
}
  0x35   : > { %s757_s17 = scalar_lea.vmem %s980_s3, 2048  ;;  %s861_s23 = smov [#allocation8]  }
  0x36   : > { %p758_p12 = scmp.ne.s32.totalorder %s980_s3, %s757_s17  ;;  %s762_s27 = sshll.u32 %s861_s23, 4  ;;  %s763_s27 = int_to_ptr.vmem [resolvable:$false] %s762_s27 }
  0x37   : > { %s764_s28 = scalar_lea.vmem %s763_s27, 4096  ;;  %p765_p3 = scmp.lt.s32.totalorder %s980_s3, %s763_s27 }
  0x38   : > { %p760_p4 = pnand %p758_p12, %p744_p2  ;;  %p766_p10 = scmp.lt.s32.totalorder %s764_s28, %s757_s17 }
  0x3a   : > { %p761_p8 = pneg %p760_p4  ;;  %p767_p11 = por %p766_p10, %p765_p3 }
  0x3c   : > { %p768_p5 = pnand %p767_p11, %p761_p8 }
  0x3e   : > { %771 = shalt.err (!%p768_p5)
}
  0x3f   : > { %s862_s30 = smov 128   ;;  %s863_s6 = smov 8  }
  0x40   : > { %657 = dma.hbm_to_vmem [thread:$0]  (!%p951_p0), %s978_s29, 2048, %s980_s3, %s987_s5, %s862_s30, %s862_s30, %s863_s6  }
  0x41   : > { %159 = sbr.rel (%p943_p13) target bundleno = 300 (0x12c), region = 28  ;;  %p1342_p9 = scmp.ne.s32.totalorder (!%p943_p13), %s1336_s18, 0 }
  0x48   : > { %825 = dma.done.wait (%p1342_p9), [#allocation7], 16  }
  0x49   : > { %827 = vsyncadd (%p1342_p9), [#allocation7], 4294967280  ;;  %s1022_s7 = sand.u32 1, %s842_s10   ;;  %p1343_p3 = scmp.ne.s32.totalorder %s1337_s19, 0 }
  0x4a   : > { %s614_s8 = sshll.u32 %s1022_s7, 7  ;;  %s166_s26 = scalar_lea.sflag [#allocation5], %s1022_s7 }
  0x4b   : > { %s1026_s15 = scalar_lea.vmem [#allocation8], %s614_s8 }
  0x4c   : > { %829 = dma.done.wait (%p1343_p3), %s166_s26, 2048  }
  0x4d   : > { %831 = vsyncadd (%p1343_p3), %s166_s26, 4294965248 }
  0x4e   : > { %174 = sfence }
  0x4f   : > { %v201_v0 = vld [vmem:[%s1026_s15 + $0x8] sm:$0xff]  ;;  %v203_v1 = vld [vmem:[%s1026_s15 + $0x18] sm:$0xff]  ;;  %v200_v5 = vld [vmem:[%s1026_s15] sm:$0xff]  ;;  %v277_v21 = vlaneseq  ;;  %s864_s18 = smov 1   ;;  %s865_s19 = smov 127  }
  0x50   : > { %v205_v2 = vld [vmem:[%s1026_s15 + $0x28] sm:$0xff]  ;;  %v225_v3 = vadd.f32 %v203_v1, %v201_v0  ;;  %v207_v4 = vld [vmem:[%s1026_s15 + $0x38] sm:$0xff]  ;;  %v202_v7 = vld [vmem:[%s1026_s15 + $0x10] sm:$0xff]  ;;  %s616_s22 = sld [smem:[#allocation4 + $0x1]]  ;;  %s1157_s24 = sld [smem:[#allocation4]] }
  0x51   : > { %v204_v8 = vld [vmem:[%s1026_s15 + $0x20] sm:$0xff]  ;;  %v209_v9 = vld [vmem:[%s1026_s15 + $0x48] sm:$0xff]  ;;  %v218_v10 = vadd.f32 %v202_v7, %v200_v5  ;;  %v206_v12 = vld [vmem:[%s1026_s15 + $0x30] sm:$0xff]  ;;  %v1051_v29 = vshrl.u32 %v277_v21, 7  ;;  %v245_v31 = vmax.f32 %v201_v0, %v205_v2  ;;  %v246_v32 = vmax.f32 %v203_v1, %v207_v4  ;;  %s1159_s29 = sld [smem:[#allocation4 + $0x2]]  ;;  %s1161_s3 = sld [smem:[#allocation4 + $0x3]] }
  0x52   : > { %v226_v6 = vadd.f32 %v225_v3, %v205_v2  ;;  %v211_v13 = vld [vmem:[%s1026_s15 + $0x58] sm:$0xff]  ;;  %v208_v16 = vld [vmem:[%s1026_s15 + $0x40] sm:$0xff]  ;;  %v213_v17 = vld [vmem:[%s1026_s15 + $0x68] sm:$0xff]  ;;  %v238_v34 = vmax.f32 %v200_v5, %v204_v8  ;;  %v239_v35 = vmax.f32 %v202_v7, %v206_v12  ;;  %s1163_s5 = sld [smem:[#allocation4 + $0x4]]  ;;  %s1168_s16 = sld [smem:[#allocation4 + $0x5]] }
  0x53   : > { %v219_v14 = vadd.f32 %v218_v10, %v204_v8  ;;  %v210_v20 = vld [vmem:[%s1026_s15 + $0x50] sm:$0xff]  ;;  %v215_v22 = vld [vmem:[%s1026_s15 + $0x78] sm:$0xff]  ;;  %v212_v25 = vld [vmem:[%s1026_s15 + $0x60] sm:$0xff]  ;;  %vm294_vm0 = vcmp.lt.s32.totalorder %v1051_v29, 1  ;;  %v247_v38 = vmax.f32 %v245_v31, %v209_v9  ;;  %v248_v39 = vmax.f32 %v246_v32, %v211_v13  ;;  %s1174_s17 = sld [smem:[#allocation4 + $0x7]]  ;;  %s1181_s23 = sld [smem:[#allocation4 + $0x6]] }
  0x54   : > { %v227_v11 = vadd.f32 %v226_v6, %v207_v4  ;;  %v214_v28 = vld [vmem:[%s1026_s15 + $0x70] sm:$0xff]  ;;  %v240_v40 = vmax.f32 %v238_v34, %v208_v16  ;;  %v241_v41 = vmax.f32 %v239_v35, %v210_v20  ;;  %vm282_vm1 = vcmp.ge.s32.totalorder %v1051_v29, 1  ;;  %s1192_s27 = sld [smem:[#allocation4 + $0x8]]  ;;  %s1194_s28 = sld [smem:[#allocation4 + $0x9]] }
  0x55   : > { %v220_v18 = vadd.f32 %v219_v14, %v206_v12  ;;  %v279_v44 = vadd.s32 8, %v1051_v29  ;;  %vm355_vm2 = vcmp.lt.s32.totalorder %v1051_v29, 7  ;;  %v249_v47 = vmax.f32 %v247_v38, %v213_v17  ;;  %s1197_s30 = sld [smem:[#allocation4 + $0xa]]  ;;  %s1209_s6 = sld [smem:[#allocation4 + $0xb]] }
  0x56   : > { %v228_v15 = vadd.f32 %v227_v11, %v209_v9  ;;  %v250_v48 = vmax.f32 %v248_v39, %v215_v22  ;;  %v242_v49 = vmax.f32 %v240_v40, %v212_v25  ;;  %v243_v50 = vmax.f32 %v241_v41, %v214_v28  ;;  %s1214_s8 = sld [smem:[#allocation4 + $0xc]]  ;;  %s1222_s26 = sld [smem:[#allocation4 + $0xd]] }
  0x57   : > { %v221_v23 = vadd.f32 %v220_v18, %v208_v16  ;;  %vm285_vm3 = vcmp.le.s32.totalorder %v279_v44, 14  ;;  %v1166_v6 = vand.u32 127, %v277_v21  ;;  %v310_v8 = vstv %s616_s22  ;;  %s1228_s15 = sld [smem:[#allocation4 + $0xe]]  ;;  %s1251_s22 = sld [smem:[#allocation4 + $0x11]] }
  0x58   : > { %v229_v19 = vadd.f32 %v228_v15, %v211_v13  ;;  %v1089_v53 = vmax.f32 %v249_v47, %v250_v48  ;;  %v1091_v54 = vmax.f32 %v242_v49, %v243_v50  ;;  %v305_v10 = vstv %s1157_s24  ;;  %s615_s24 = sshll.u32 %s1022_s7, 4  ;;  %p1344_p13 = scmp.ne.s32.totalorder %s1338_s20, 0 }
  0x59   : > { %v222_v26 = vadd.f32 %v221_v23, %v210_v20  ;;  %vm286_vm4 = vcmp.ge.s32.totalorder %v1166_v6, 1  ;;  %vm287_vm5 = vcmp.le.s32.totalorder %v1166_v6, 126  ;;  %v321_v13 = vstv %s1159_s29  ;;  %s641_s29 = sshll.u32 %s850_s12, 8  ;;  %s866_s12 = smov [#allocation9]  }
  0x5a   : > { %v230_v24 = vadd.f32 %v229_v19, %v213_v17  ;;  %v387_v57 = vrot.slane %v1091_v54, 7  ;;  %v388_v58 = vrot.slane %v1089_v53, 7  ;;  %v447_v62 = vrot.slane %v1091_v54, 1 }
  0x5b   : > { %v223_v30 = vadd.f32 %v222_v26, %v212_v25  ;;  %v448_v63 = vrot.slane %v1089_v53, 1  ;;  %v332_v18 = vstv %s1161_s3  ;;  %v337_v20 = vstv %s1163_s5  ;;  %s190_s3 = scalar_lea.vmem [#allocation9], %s615_s24 }
  0x5c   : > { %v1047_v27 = vadd.f32 %v230_v24, %v215_v22  ;;  %v1112_v59 = vsel %vm294_vm0, %v387_v57, %v388_v58  ;;  %v390_v60 = vsel %vm294_vm0, %v388_v58, %v387_v57  ;;  %v348_v35 = vstv %s1168_s16  ;;  %s508_s5 = sshll.u32 %s190_s3, 4  ;;  %s1280_s5 = int_to_ptr.vmem [resolvable:$true] %s508_s5 }
  0x5d   : > { %v1055_v33 = vadd.f32 %v223_v30, %v214_v28  ;;  %v1122_v61 = vsel %vm282_vm1, %v390_v60, 0.0  ;;  %v450_v0 = vsel %vm355_vm2, %v448_v63, %v447_v62  ;;  %v1149_v2 = vsel %vm355_vm2, %v447_v62, %v448_v63 }
  0x5e   : > { %328 = vrot.lane.b32.xlu1 %v1047_v27, %s864_s18  ;;  %v293_v36 = vrot.slane %v1047_v27, 7  ;;  %v354_v46 = vrot.slane %v1047_v27, 1  ;;  %v1141_v1 = vsel %vm285_vm3, %v450_v0, 0.0  ;;  %v339_v32 = vmul.f32 %v337_v20, %v1047_v27 }
  0x5f   : > { %326 = vrot.lane.b32.xlu0 %v1055_v33, %s864_s18  ;;  %v292_v37 = vrot.slane %v1055_v33, 7  ;;  %v353_v45 = vrot.slane %v1055_v33, 1  ;;  %v382_v60 = vstv %s1192_s27  ;;  %v399_v63 = vstv %s1194_s28  ;;  %s495_s27 = scalar_lea.sflag [#allocation6], %s1022_s7  ;;  %s772_s28 = scalar_lea.vmem %s1280_s5, 256 }
  0x60   : > { %p773_p8 = scmp.ne.s32.totalorder %s1280_s5, %s772_s28 }
  0x61   : > { %v1066_v42 = vsel %vm294_vm0, %v292_v37, %v293_v36  ;;  %v296_v43 = vsel %vm294_vm0, %v293_v36, %v292_v37  ;;  %v357_v52 = vsel %vm355_vm2, %v354_v46, %v353_v45  ;;  %v1102_v56 = vsel %vm355_vm2, %v353_v45, %v354_v46 }
  0x62   : > { %344 = vrot.lane.b32.xlu1 %v1047_v27, %s865_s19  ;;  %v1081_v51 = vsel %vm282_vm1, %v296_v43, 0.0  ;;  %v1094_v55 = vsel %vm285_vm3, %v357_v52, 0.0  ;;  %v312_v11 = vmul.f32 %v310_v8, %v1066_v42  ;;  %v371_v37 = vstv %s1174_s17  ;;  %p774_p0 = pnand %p773_p8, %p1344_p13 }
  0x63   : > { %342 = vrot.lane.b32.xlu0 %v1055_v33, %s865_s19  ;;  %v311_v21 = vmul.f32 %v310_v8, %v1081_v51  ;;  %v338_v27 = vmul.f32 %v337_v20, %v1055_v33  ;;  %v373_v49 = vmul.f32 %v371_v37, %v1094_v55  ;;  %v404_v8 = vstv %s1197_s30  ;;  %s776_s30 = sshll.u32 %s866_s12, 4  ;;  %s777_s30 = int_to_ptr.vmem [resolvable:$false] %s776_s30 }
  0x64   : > { %p775_p2 = pneg %p774_p0  ;;  %p779_p6 = scmp.lt.s32.totalorder %s1280_s5, %s777_s30 }
  0x66   : > { %317 = vrot.lane.b32.xlu1 %v1066_v42, %s865_s19 }
  0x67   : > { %301 = vrot.lane.b32.xlu0 %v1066_v42, %s864_s18  ;;  %v366_v42 = vstv %s1181_s23  ;;  %s1278_s23 = scalar_lea.hbm %s1331_s2, %s641_s29 }
  0x6a   : > { %315 = vrot.lane.b32.xlu1 %v1081_v51, %s865_s19 }
  0x6b   : > { %299 = vrot.lane.b32.xlu0 %v1081_v51, %s864_s18 }
  0x6e   : > { %362 = vrot.lane.b32.xlu1 %v1094_v55, %s864_s18 }
  0x6f   : > { %360 = vrot.lane.b32.xlu0 %v1102_v56, %s864_s18 }
  0x72   : > { %378 = vrot.lane.b32.xlu1 %v1094_v55, %s865_s19 }
  0x73   : > { %376 = vrot.lane.b32.xlu0 %v1102_v56, %s865_s19 }
  0x76   : > { %395 = vrot.lane.b32.xlu1 %v1112_v59, %s864_s18 }
  0x77   : > { %393 = vrot.lane.b32.xlu0 %v1122_v61, %s864_s18 }
  0x7a   : > { %411 = vrot.lane.b32.xlu1 %v1112_v59, %s865_s19 }
  0x7b   : > { %409 = vrot.lane.b32.xlu0 %v1122_v61, %s865_s19 }
  0x7e   : > { %422 = vrot.lane.b32.xlu1 %v1089_v53, %s864_s18 }
  0x7f   : > { %420 = vrot.lane.b32.xlu0 %v1091_v54, %s864_s18 }
  0x82   : > { %438 = vrot.lane.b32.xlu1 %v1089_v53, %s865_s19 }
  0x83   : > { %436 = vrot.lane.b32.xlu0 %v1091_v54, %s865_s19 }
  0x86   : > { %455 = vrot.lane.b32.xlu1 %v1141_v1, %s864_s18 }
  0x87   : > { %453 = vrot.lane.b32.xlu0 %v1149_v2, %s864_s18  ;;  %s1236_s18 = sld [smem:[#allocation4 + $0x10]] }
  0x8a   : > { %471 = vrot.lane.b32.xlu1 %v1141_v1, %s865_s19 }
  0x8b   : > { %469 = vrot.lane.b32.xlu0 %v1149_v2, %s865_s19  ;;  %s1241_s19 = sld [smem:[#allocation4 + $0xf]] }
  0xd0   : > { %v329_v3 = vpop.permute.xlu1 %328 }
  0xd1   : > { %v327_v4 = vpop.permute.xlu0 %326  ;;  %v331_v19 = vsel %vm286_vm4, %v329_v3, 0.0 }
  0xd2   : > { %v334_v29 = vmul.f32 %v332_v18, %v331_v19  ;;  %v330_v34 = vsel %vm286_vm4, %v327_v4, 0.0 }
  0xd3   : > { %v333_v45 = vmul.f32 %v332_v18, %v330_v34  ;;  %v406_v18 = vmul.f32 %v404_v8, %v1112_v59  ;;  %v405_v59 = vmul.f32 %v404_v8, %v1122_v61  ;;  %v442_v61 = vstv %s1228_s15 }
  0xd4   : > { %v345_v5 = vpop.permute.xlu1 %344 }
  0xd5   : > { %v343_v7 = vpop.permute.xlu0 %342  ;;  %v347_v36 = vsel %vm287_vm5, %v345_v5, 0.0 }
  0xd6   : > { %v350_v46 = vmul.f32 %v348_v35, %v347_v36  ;;  %v346_v50 = vsel %vm287_vm5, %v343_v7, 0.0  ;;  %v372_v7 = vmul.f32 %v371_v37, %v1102_v56 }
  0xd7   : > { %v349_v55 = vmul.f32 %v348_v35, %v346_v50 }
  0xd8   : > { %v318_v9 = vpop.permute.xlu1 %317 }
  0xd9   : > { %v302_v12 = vpop.permute.xlu0 %301  ;;  %v320_v14 = vsel %vm287_vm5, %v318_v9, 0.0 }
  0xda   : > { %v304_v15 = vsel %vm286_vm4, %v302_v12, 0.0  ;;  %v323_v22 = vmul.f32 %v321_v13, %v320_v14 }
  0xdb   : > { %v307_v17 = vmul.f32 %v305_v10, %v304_v15 }
  0xdc   : > { %v316_v16 = vpop.permute.xlu1 %315 }
  0xdd   : > { %v314_v23 = vadd.f32 %v312_v11, %v307_v17  ;;  %v300_v24 = vpop.permute.xlu0 %299  ;;  %v319_v25 = vsel %vm287_vm5, %v316_v16, 0.0  ;;  %v415_v16 = vstv %s1209_s6  ;;  %s778_s6 = scalar_lea.vmem %s777_s30, 512 }
  0xde   : > { %v303_v26 = vsel %vm286_vm4, %v300_v24, 0.0  ;;  %v322_v39 = vmul.f32 %v321_v13, %v319_v25  ;;  %p780_p1 = scmp.lt.s32.totalorder %s778_s6, %s772_s28 }
  0xdf   : > { %v325_v30 = vadd.f32 %v323_v22, %v314_v23  ;;  %v306_v31 = vmul.f32 %v305_v10, %v303_v26  ;;  %v426_v22 = vstv %s1214_s8 }
  0xe0   : > { %v363_v28 = vpop.permute.xlu1 %362  ;;  %p781_p7 = por %p780_p1, %p779_p6 }
  0xe1   : > { %v336_v38 = vadd.f32 %v334_v29, %v325_v30  ;;  %v313_v40 = vadd.f32 %v311_v21, %v306_v31  ;;  %v361_v41 = vpop.permute.xlu0 %360  ;;  %v365_v43 = vsel %vm286_vm4, %v363_v28, 0.0  ;;  %v431_v30 = vstv %s1222_s26 }
  0xe2   : > { %v368_v57 = vmul.f32 %v366_v42, %v365_v43  ;;  %v364_v33 = vsel %vm286_vm4, %v361_v41, 0.0  ;;  %v433_v41 = vmul.f32 %v431_v30, %v1089_v53  ;;  %p782_p12 = pnand %p781_p7, %p775_p2 }
  0xe3   : > { %v324_v47 = vadd.f32 %v322_v39, %v313_v40  ;;  %v341_v48 = vadd.f32 %v339_v32, %v336_v38  ;;  %v367_v9 = vmul.f32 %v366_v42, %v364_v33 }
  0xe4   : > { %v379_v44 = vpop.permute.xlu1 %378 }
  0xe5   : > { %v335_v51 = vadd.f32 %v333_v45, %v324_v47  ;;  %v352_v52 = vadd.f32 %v350_v46, %v341_v48  ;;  %v377_v58 = vpop.permute.xlu0 %376  ;;  %v381_v62 = vsel %vm287_vm5, %v379_v44, 0.0  ;;  %v464_v47 = vstv %s1236_s18 }
  0xe6   : > { %v384_v12 = vmul.f32 %v382_v60, %v381_v62  ;;  %v380_v15 = vsel %vm287_vm5, %v377_v58, 0.0 }
  0xe7   : > { %v370_v3 = vadd.f32 %v368_v57, %v352_v52  ;;  %v340_v4 = vadd.f32 %v338_v27, %v335_v51  ;;  %v383_v24 = vmul.f32 %v382_v60, %v380_v15  ;;  %v459_v57 = vstv %s1241_s19 }
  0xe8   : > { %v396_v0 = vpop.permute.xlu1 %395 }
  0xe9   : > { %v398_v5 = vsel %vm286_vm4, %v396_v0, 0.0  ;;  %v351_v10 = vadd.f32 %v349_v55, %v340_v4  ;;  %v375_v11 = vadd.f32 %v373_v49, %v370_v3  ;;  %v394_v14 = vpop.permute.xlu0 %393  ;;  %v432_v49 = vmul.f32 %v431_v30, %v1091_v54 }
  0xea   : > { %v401_v13 = vmul.f32 %v399_v63, %v398_v5  ;;  %v397_v21 = vsel %vm286_vm4, %v394_v14, 0.0  ;;  %v466_v0 = vmul.f32 %v464_v47, %v1141_v1  ;;  %v475_v5 = vstv %s1251_s22 }
  0xeb   : > { %v369_v19 = vadd.f32 %v367_v9, %v351_v10  ;;  %v386_v56 = vadd.f32 %v384_v12, %v375_v11  ;;  %v400_v32 = vmul.f32 %v399_v63, %v397_v21  ;;  %v465_v10 = vmul.f32 %v464_v47, %v1149_v2 }
  0xec   : > { %v412_v17 = vpop.permute.xlu1 %411 }
  0xed   : > { %v414_v20 = vsel %vm287_vm5, %v412_v17, 0.0  ;;  %v374_v23 = vadd.f32 %v372_v7, %v369_v19  ;;  %v403_v25 = vadd.f32 %v401_v13, %v386_v56  ;;  %v410_v28 = vpop.permute.xlu0 %409 }
  0xee   : > { %v417_v26 = vmul.f32 %v415_v16, %v414_v20  ;;  %v413_v36 = vsel %vm287_vm5, %v410_v28, 0.0 }
  0xef   : > { %v385_v31 = vadd.f32 %v383_v24, %v374_v23  ;;  %v408_v34 = vadd.f32 %v406_v18, %v403_v25  ;;  %v416_v44 = vmul.f32 %v415_v16, %v413_v36 }
  0xf0   : > { %v423_v29 = vpop.permute.xlu1 %422 }
  0xf1   : > { %v425_v35 = vsel %vm286_vm4, %v423_v29, 0.0  ;;  %v402_v38 = vadd.f32 %v400_v32, %v385_v31  ;;  %v419_v39 = vadd.f32 %v417_v26, %v408_v34  ;;  %v421_v40 = vpop.permute.xlu0 %420 }
  0xf2   : > { %v428_v37 = vmul.f32 %v426_v22, %v425_v35  ;;  %v424_v42 = vsel %vm286_vm4, %v421_v40, 0.0 }
  0xf3   : > { %v407_v27 = vadd.f32 %v405_v59, %v402_v38  ;;  %v427_v50 = vmul.f32 %v426_v22, %v424_v42 }
  0xf4   : > { %v439_v43 = vpop.permute.xlu1 %438  ;;  %v430_v45 = vadd.f32 %v428_v37, %v419_v39 }
  0xf5   : > { %v441_v46 = vsel %vm287_vm5, %v439_v43, 0.0  ;;  %v418_v53 = vadd.f32 %v416_v44, %v407_v27  ;;  %v437_v52 = vpop.permute.xlu0 %436 }
  0xf6   : > { %v444_v48 = vmul.f32 %v442_v61, %v441_v46  ;;  %v435_v51 = vadd.f32 %v433_v41, %v430_v45  ;;  %v440_v33 = vsel %vm287_vm5, %v437_v52, 0.0 }
  0xf7   : > { %v429_v60 = vadd.f32 %v427_v50, %v418_v53  ;;  %v443_v54 = vmul.f32 %v442_v61, %v440_v33 }
  0xf8   : > { %v456_v58 = vpop.permute.xlu1 %455  ;;  %v446_v62 = vadd.f32 %v444_v48, %v435_v51 }
  0xf9   : > { %v458_v63 = vsel %vm286_vm4, %v456_v58, 0.0  ;;  %v434_v3 = vadd.f32 %v432_v49, %v429_v60  ;;  %v454_v4 = vpop.permute.xlu0 %453 }
  0xfa   : > { %v461_v55 = vmul.f32 %v459_v57, %v458_v63  ;;  %v457_v8 = vsel %vm286_vm4, %v454_v4, 0.0 }
  0xfb   : > { %v445_v11 = vadd.f32 %v443_v54, %v434_v3  ;;  %v460_v12 = vmul.f32 %v459_v57, %v457_v8 }
  0xfc   : > { %v463_v7 = vadd.f32 %v461_v55, %v446_v62  ;;  %v472_v9 = vpop.permute.xlu1 %471 }
  0xfd   : > { %v474_v13 = vsel %vm287_vm5, %v472_v9, 0.0  ;;  %v462_v1 = vadd.f32 %v460_v12, %v445_v11  ;;  %v470_v16 = vpop.permute.xlu0 %469 }
  0xfe   : > { %v468_v14 = vadd.f32 %v466_v0, %v463_v7  ;;  %v477_v15 = vmul.f32 %v475_v5, %v474_v13  ;;  %v473_v18 = vsel %vm287_vm5, %v470_v16, 0.0 }
  0xff   : > { %v467_v19 = vadd.f32 %v465_v10, %v462_v1  ;;  %v476_v56 = vmul.f32 %v475_v5, %v473_v18 }
 0x100   : > { %v479_v17 = vadd.f32 %v477_v15, %v468_v14 }
 0x101   : > { %v478_v21 = vadd.f32 %v476_v56, %v467_v19 }
 0x102   : > { %v634_v20 = vmul.f32 -1.442695, %v479_v17 }
 0x103   : > { %v633_v2 = vmul.f32 -1.442695, %v478_v21 }
 0x104   : > { %721 = vpow2.f32 %v634_v20 }
 0x105   : > { %723 = vpow2.f32 %v633_v2 }
 0x10e   : > { %v722_v22 = vpop.eup %721 }
 0x10f   : > { %v487_v23 = vadd.f32 1.0, %v722_v22  ;;  %v724_v24 = vpop.eup %723 }
 0x110   : > { %v486_v25 = vadd.f32 1.0, %v724_v24 }
 0x111   : > { %725 = vrcp.f32 %v487_v23 }
 0x112   : > { %727 = vrcp.f32 %v486_v25 }
 0x11b   : > { %v726_v6 = vpop.eup %725 }
 0x11c   : > { %493 = vst [vmem:[%s190_s3 + $0x8] sm:$0xff] %v726_v6  ;;  %v728_v26 = vpop.eup %727 }
 0x11d   : > { %492 = vst [vmem:[%s190_s3] sm:$0xff] %v728_v26 }
 0x11e   : > { %785 = shalt.err (!%p782_p12)
}
 0x11f   : > { %s786_s8 = scalar_lea.hbm %s1278_s23, 256  ;;  %s790_s18 = scalar_lea.hbm %s1331_s2, 512 }
 0x120   : > { %p787_p4 = scmp.ne.s32.totalorder %s1278_s23, %s786_s8  ;;  %p791_p5 = scmp.lt.u32.totalorder %s1278_s23, %s1331_s2 }
 0x121   : > { %p792_p9 = scmp.lt.u32.totalorder %s790_s18, %s786_s8  ;;  %p794_p8 = scmp.lt.u32.totalorder %s786_s8, %s1278_s23 }
 0x122   : > { %p788_p10 = pnand %p787_p4, %p1344_p13 }
 0x123   : > { %p793_p3 = por %p792_p9, %p791_p5 }
 0x124   : > { %p789_p11 = pneg %p788_p10 }
 0x125   : > { %p795_p0 = por %p794_p8, %p793_p3 }
 0x127   : > { %p796_p2 = pnand %p795_p0, %p789_p11 }
 0x129   : > { %799 = shalt.err (!%p796_p2)
}
 0x12a   : > { %s867_s24 = smov 128   ;;  %s868_s29 = smov 8  }
 0x12b   : > { %648 = dma.vmem_to_hbm [thread:$0]  (%p1344_p13), %s1280_s5, 256, %s1278_s23, %s495_s27, %s867_s24, %s867_s24, %s868_s29  }
 0x12c PF: > { %s523_s3 = sand.u32 1, %s838_s9   ;;  %p1345_p6 = scmp.ne.s32.totalorder %s1339_s21, 0 }
 0x12d   : > { %p1346_p1 = scmp.ge.s32.totalorder %s858_s14, 2  ;;  %s524_s16 = scalar_lea.sflag [#allocation6], %s523_s3 }
 0x12f   : > { %p659_p7 = pnand %p1346_p1, %p1345_p6 }
 0x131   : > { %833 = dma.done.wait (!%p659_p7), %s524_s16, 256  }
 0x132   : > { %835 = vsyncadd (!%p659_p7), %s524_s16, 4294967040  ;;  %s19_s14 = sadd.s32 1, %s858_s14   ;;  %s1347_s9 = smov %s842_s10 }
 0x133   : > { %p16_p12 = scmp.ge.s32.totalorder %s19_s14, 4   ;;  %s1348_s10 = smov %s846_s11 }
 0x134   : > { %s1349_s11 = smov %s985_s4  ;;  %s1350_s12 = smov %s854_s13 }
 0x135   : > { %s1351_s13 = smov %s1353_s25  ;;  %18 = sbr.rel (!%p16_p12) target bundleno = 7 (0x7), region = 86 }
 0x13c   :  { %529 = vsyncpa [#allocation5], 1 }
 0x13d   :  { %531 = vsyncpa [#allocation5 + $0x1], 1 }
 0x13e   :  { %532 = vsyncpa [#allocation6], 1 }
 0x13f   :  { %534 = vsyncpa [#allocation6 + $0x1], 1 }
 0x140   :  { %535 = vsyncpa [#allocation7], 1 }
 0x141   :  { %537 = vsyncpa [#allocation7 + $0x1], 1 }

</bundles_post_ra>
